<compile_context>
chip_gen: v6e
topology: v6e:2x2x1
jax: 0.10.0
libtpu: 0.0.40
codegen_flags: <defaults>
</compile_context>

<pallas_src>
import functools

import jax
import jax.numpy as jnp
from jax.experimental import pallas as pl
from jax.experimental.pallas import tpu as pltpu


# ---------------------------------------------------------------------------
# Kernel
# ---------------------------------------------------------------------------
def _channel_net_kernel(x_ref, w1_ref, b1_ref, w2_ref, b2_ref, w3_ref, b3_ref,
                        o_ref):
    """Fused forward: tanh(x@W1+b1) -> relu(.@W2+b2) -> .@W3+b3.

    x_ref:  (TB, IN_P)  bf16
    w*_ref: (K_P, N_P)  bf16   (VMEM-resident across batch tiles)
    b*_ref: (1, N_P)    f32
    o_ref:  (TB, OUT_P) f32
    """
    x = x_ref[...]                                              # bf16

    # fc1 + tanh  (MXU matmul in bf16, f32 accumulate; EUP tanh in f32)
    h1 = jnp.dot(x, w1_ref[...], preferred_element_type=jnp.float32)
    h1 = jnp.tanh(h1 + b1_ref[...])                             # (TB, H1_P) f32

    # fc2 + relu
    h2 = jnp.dot(h1.astype(w2_ref.dtype), w2_ref[...],
                 preferred_element_type=jnp.float32)
    h2 = jnp.maximum(h2 + b2_ref[...], 0.0)                     # (TB, H2_P) f32

    # fc3 (no activation)
    out = jnp.dot(h2.astype(w3_ref.dtype), w3_ref[...],
                  preferred_element_type=jnp.float32)
    o_ref[...] = (out + b3_ref[...]).astype(o_ref.dtype)


# ---------------------------------------------------------------------------
# Wrapper
# ---------------------------------------------------------------------------
_LANE = 128


def _round_up(n, m):
    return ((n + m - 1) // m) * m


def _pad2d(a, rows, cols):
    return jnp.pad(a, ((0, rows - a.shape[0]), (0, cols - a.shape[1])))


@jax.jit
def channel_net_forward(x, w1, b1, w2, b2, w3, b3):
    """x: (B, input_size) f32; w_i pre-transposed (in, out) f32; b_i: (out,) f32."""
    B, in_size = x.shape
    h1_size, h2_size, out_size = w1.shape[1], w2.shape[1], w3.shape[1]

    # Padded (lane-dense) feature dims.
    in_p = _round_up(in_size, _LANE)
    h1_p = _round_up(h1_size, _LANE)
    h2_p = _round_up(h2_size, _LANE)
    out_p = _round_up(out_size, _LANE)

    # Batch tile: multiple of 16 (bf16 sublane packing), capped at 512.
    b_min = _round_up(B, 16)
    tb = min(512, b_min)
    b_pad = _round_up(B, tb)

    # Pad + cast matmul operands to bf16 (f32 accumulation inside the kernel).
    xp = _pad2d(x, b_pad, in_p).astype(jnp.bfloat16)
    w1p = _pad2d(w1, in_p, h1_p).astype(jnp.bfloat16)
    w2p = _pad2d(w2, h1_p, h2_p).astype(jnp.bfloat16)
    w3p = _pad2d(w3, h2_p, out_p).astype(jnp.bfloat16)
    # Biases as lane-aligned (1, N) rows, kept in f32.
    b1p = _pad2d(b1[None, :], 1, h1_p)
    b2p = _pad2d(b2[None, :], 1, h2_p)
    b3p = _pad2d(b3[None, :], 1, out_p)

    grid = (b_pad // tb,)
    tiled = lambda bs: pl.BlockSpec(bs, lambda i: (i, 0))   # batch-tiled
    resident = lambda bs: pl.BlockSpec(bs, lambda i: (0, 0))  # VMEM-resident

    out_padded = pl.pallas_call(
        _channel_net_kernel,
        out_shape=jax.ShapeDtypeStruct((b_pad, out_p), jnp.float32),
        grid_spec=pltpu.PrefetchScalarGridSpec(
            num_scalar_prefetch=0,
            grid=grid,
            in_specs=[
                tiled((tb, in_p)),          # x
                resident((in_p, h1_p)),     # W1
                resident((1, h1_p)),        # b1
                resident((h1_p, h2_p)),     # W2
                resident((1, h2_p)),        # b2
                resident((h2_p, out_p)),    # W3
                resident((1, out_p)),       # b3
            ],
            out_specs=tiled((tb, out_p)),
        ),
        compiler_params=pltpu.CompilerParams(
            dimension_semantics=("parallel",)),
    )(xp, w1p, b1p, w2p, b2p, w3p, b3p)

    return out_padded[:B, :out_size]


# ---------------------------------------------------------------------------
# Params (mimics nn.Linear init; weights returned pre-transposed to (in, out))
# ---------------------------------------------------------------------------
def init_channel_net_params(key, hidden_layers, input_size, output_size,
                            dtype=jnp.float32):
    h1, h2 = hidden_layers[0][0], hidden_layers[1][0]
    dims = [(input_size, h1), (h1, h2), (h2, output_size)]
    params = []
    for (fan_in, fan_out) in dims:
        key, kw, kb = jax.random.split(key, 3)
        bound = 1.0 / jnp.sqrt(jnp.asarray(fan_in, dtype))
        w = jax.random.uniform(kw, (fan_in, fan_out), dtype, -bound, bound)
        b = jax.random.uniform(kb, (fan_out,), dtype, -bound, bound)
        params += [w, b]
    return params


if __name__ == "__main__":
    key = jax.random.PRNGKey(0)

    # Small shapes implied by the module: flat feature vectors through 3 FCs.
    batch = 8
    input_size = 16
    hidden_layers = [[32], [32]]
    output_size = 8

    key, kx = jax.random.split(key)
    x = jax.random.normal(kx, (batch, input_size), jnp.float32)

    w1, b1, w2, b2, w3, b3 = init_channel_net_params(
        key, hidden_layers, input_size, output_size)

    out = channel_net_forward(x, w1, b1, w2, b2, w3, b3)
    jax.block_until_ready(out)
    assert out.shape == (batch, output_size)

    # Reference with the same bf16-operand / f32-accumulate recipe as the
    # kernel (tight tolerance) ...
    bf = jnp.bfloat16
    h = jnp.tanh(jnp.dot(x.astype(bf), w1.astype(bf),
                         preferred_element_type=jnp.float32) + b1)
    h = jax.nn.relu(jnp.dot(h.astype(bf), w2.astype(bf),
                            preferred_element_type=jnp.float32) + b2)
    ref_bf16 = jnp.dot(h.astype(bf), w3.astype(bf),
                       preferred_element_type=jnp.float32) + b3
    assert jnp.allclose(out, ref_bf16, atol=2e-3, rtol=2e-3), \
        "mismatch vs bf16-operand reference"

    # ... and a pure-f32 reference (loose tolerance, semantics check).
    ref_f32 = jnp.tanh(x @ w1 + b1)
    ref_f32 = jax.nn.relu(ref_f32 @ w2 + b2)
    ref_f32 = ref_f32 @ w3 + b3
    assert jnp.allclose(out, ref_f32, atol=5e-2, rtol=5e-2), \
        "mismatch vs f32 reference"

    print("KERNEL_OK")
</pallas_src>

<mosaic_0001>
module attributes {stable_mosaic.version = 11 : i64} {
  func.func @_channel_net_kernel(%arg0: i32, %arg1: memref<16x128xbf16, #tpu.memory_space<vmem>>, %arg2: memref<128x128xbf16, #tpu.memory_space<vmem>>, %arg3: memref<1x128xf32, #tpu.memory_space<vmem>>, %arg4: memref<128x128xbf16, #tpu.memory_space<vmem>>, %arg5: memref<1x128xf32, #tpu.memory_space<vmem>>, %arg6: memref<128x128xbf16, #tpu.memory_space<vmem>>, %arg7: memref<1x128xf32, #tpu.memory_space<vmem>>, %arg8: memref<16x128xf32, #tpu.memory_space<vmem>>) attributes {dimension_semantics = [#tpu.dimension_semantics<parallel>], iteration_bounds = array<i64: 1>, scalar_prefetch = 0 : i64, scratch_operands = 0 : i64, tpu.core_type = #tpu.core_type<tc>, window_params = [{transform_indices = @transform_0, window_bounds = array<i64: 16, 128>}, {pipeline_mode = #tpu.pipeline_mode<synchronous>, transform_indices = @transform_1, window_bounds = array<i64: 128, 128>}, {pipeline_mode = #tpu.pipeline_mode<synchronous>, transform_indices = @transform_2, window_bounds = array<i64: 1, 128>}, {pipeline_mode = #tpu.pipeline_mode<synchronous>, transform_indices = @transform_3, window_bounds = array<i64: 128, 128>}, {pipeline_mode = #tpu.pipeline_mode<synchronous>, transform_indices = @transform_4, window_bounds = array<i64: 1, 128>}, {pipeline_mode = #tpu.pipeline_mode<synchronous>, transform_indices = @transform_5, window_bounds = array<i64: 128, 128>}, {pipeline_mode = #tpu.pipeline_mode<synchronous>, transform_indices = @transform_6, window_bounds = array<i64: 1, 128>}, {transform_indices = @transform_7, window_bounds = array<i64: 16, 128>}]} {
    %c0 = arith.constant 0 : index
    %c0_0 = arith.constant 0 : index
    %0 = vector.load %arg1[%c0, %c0_0] : memref<16x128xbf16, #tpu.memory_space<vmem>>, vector<16x128xbf16>
    %c0_1 = arith.constant 0 : index
    %c0_2 = arith.constant 0 : index
    %1 = vector.load %arg2[%c0_1, %c0_2] : memref<128x128xbf16, #tpu.memory_space<vmem>>, vector<128x128xbf16>
    %cst = arith.constant dense<0.000000e+00> : vector<16x128xf32>
    %2 = tpu.matmul %0, %1, %cst {dimension_numbers = #tpu.dot_dimension_numbers<[1], [0], [0], [1], [0, 0, 1, 1], [], []>} : vector<16x128xbf16>, vector<128x128xbf16>, vector<16x128xf32> -> vector<16x128xf32>
    %c0_3 = arith.constant 0 : index
    %c0_4 = arith.constant 0 : index
    %3 = vector.load %arg3[%c0_3, %c0_4] : memref<1x128xf32, #tpu.memory_space<vmem>>, vector<1x128xf32>
    %4 = vector.broadcast %3 : vector<1x128xf32> to vector<16x128xf32>
    %5 = arith.addf %2, %4 : vector<16x128xf32>
    %6 = math.tanh %5 : vector<16x128xf32>
    %7 = arith.truncf %6 : vector<16x128xf32> to vector<16x128xbf16>
    %c0_5 = arith.constant 0 : index
    %c0_6 = arith.constant 0 : index
    %8 = vector.load %arg4[%c0_5, %c0_6] : memref<128x128xbf16, #tpu.memory_space<vmem>>, vector<128x128xbf16>
    %cst_7 = arith.constant dense<0.000000e+00> : vector<16x128xf32>
    %9 = tpu.matmul %7, %8, %cst_7 {dimension_numbers = #tpu.dot_dimension_numbers<[1], [0], [0], [1], [0, 0, 1, 1], [], []>} : vector<16x128xbf16>, vector<128x128xbf16>, vector<16x128xf32> -> vector<16x128xf32>
    %c0_8 = arith.constant 0 : index
    %c0_9 = arith.constant 0 : index
    %10 = vector.load %arg5[%c0_8, %c0_9] : memref<1x128xf32, #tpu.memory_space<vmem>>, vector<1x128xf32>
    %11 = vector.broadcast %10 : vector<1x128xf32> to vector<16x128xf32>
    %12 = arith.addf %9, %11 : vector<16x128xf32>
    %cst_10 = arith.constant 0.000000e+00 : f32
    %13 = vector.broadcast %cst_10 : f32 to vector<16x128xf32>
    %14 = arith.maximumf %12, %13 : vector<16x128xf32>
    %15 = arith.truncf %14 : vector<16x128xf32> to vector<16x128xbf16>
    %c0_11 = arith.constant 0 : index
    %c0_12 = arith.constant 0 : index
    %16 = vector.load %arg6[%c0_11, %c0_12] : memref<128x128xbf16, #tpu.memory_space<vmem>>, vector<128x128xbf16>
    %cst_13 = arith.constant dense<0.000000e+00> : vector<16x128xf32>
    %17 = tpu.matmul %15, %16, %cst_13 {dimension_numbers = #tpu.dot_dimension_numbers<[1], [0], [0], [1], [0, 0, 1, 1], [], []>} : vector<16x128xbf16>, vector<128x128xbf16>, vector<16x128xf32> -> vector<16x128xf32>
    %c0_14 = arith.constant 0 : index
    %c0_15 = arith.constant 0 : index
    %18 = vector.load %arg7[%c0_14, %c0_15] : memref<1x128xf32, #tpu.memory_space<vmem>>, vector<1x128xf32>
    %19 = vector.broadcast %18 : vector<1x128xf32> to vector<16x128xf32>
    %20 = arith.addf %17, %19 : vector<16x128xf32>
    %c0_16 = arith.constant 0 : index
    %c0_17 = arith.constant 0 : index
    %21 = vector.load %arg8[%c0_16, %c0_17] : memref<16x128xf32, #tpu.memory_space<vmem>>, vector<16x128xf32>
    tpu.vector_store %arg8[%c0_16, %c0_17], %20 {strides = array<i32>} : memref<16x128xf32, #tpu.memory_space<vmem>>, vector<16x128xf32>,
    return
  }
  func.func @transform_0(%arg0: i32) -> (i32, i32) {
    %c0_i32 = arith.constant 0 : i32
    %c0_i32_0 = arith.constant 0 : i32
    return %arg0, %c0_i32 : i32, i32
  }
  func.func @transform_1(%arg0: i32) -> (i32, i32) {
    %c0_i32 = arith.constant 0 : i32
    %c0_i32_0 = arith.constant 0 : i32
    %c0_i32_1 = arith.constant 0 : i32
    return %c0_i32, %c0_i32_0 : i32, i32
  }
  func.func @transform_2(%arg0: i32) -> (i32, i32) {
    %c0_i32 = arith.constant 0 : i32
    %c0_i32_0 = arith.constant 0 : i32
    %c0_i32_1 = arith.constant 0 : i32
    return %c0_i32, %c0_i32_0 : i32, i32
  }
  func.func @transform_3(%arg0: i32) -> (i32, i32) {
    %c0_i32 = arith.constant 0 : i32
    %c0_i32_0 = arith.constant 0 : i32
    %c0_i32_1 = arith.constant 0 : i32
    return %c0_i32, %c0_i32_0 : i32, i32
  }
  func.func @transform_4(%arg0: i32) -> (i32, i32) {
    %c0_i32 = arith.constant 0 : i32
    %c0_i32_0 = arith.constant 0 : i32
    %c0_i32_1 = arith.constant 0 : i32
    return %c0_i32, %c0_i32_0 : i32, i32
  }
  func.func @transform_5(%arg0: i32) -> (i32, i32) {
    %c0_i32 = arith.constant 0 : i32
    %c0_i32_0 = arith.constant 0 : i32
    %c0_i32_1 = arith.constant 0 : i32
    return %c0_i32, %c0_i32_0 : i32, i32
  }
  func.func @transform_6(%arg0: i32) -> (i32, i32) {
    %c0_i32 = arith.constant 0 : i32
    %c0_i32_0 = arith.constant 0 : i32
    %c0_i32_1 = arith.constant 0 : i32
    return %c0_i32, %c0_i32_0 : i32, i32
  }
  func.func @transform_7(%arg0: i32) -> (i32, i32) {
    %c0_i32 = arith.constant 0 : i32
    %c0_i32_0 = arith.constant 0 : i32
    return %arg0, %c0_i32 : i32, i32
  }
}

</mosaic_0001>

<bundles_post_ra>
// kernel: channel_net_forward.1
= control target key start
LH: loop header
LB: loop body
LE: loop exit
PB: predicated region body
PF: predicated region fallthrough
CT: control target
= control target key end

     0   :  { %v529_v0 = vmov 0.0   ;;  %vm530_vm0 = vmmov 0   ;;  %s691_s1 = inlined_call_operand.vmem [shape: bf16[128,128], index: 1, kind: input, shape index: {}]   ;;  %s692_s3 = inlined_call_operand.vmem [shape: bf16[128,128], index: 3, kind: input, shape index: {}]   ;;  %s693_s0 = inlined_call_operand.vmem [shape: bf16[16,128], index: 0, kind: input, shape index: {}]   ;;  %s694_s5 = inlined_call_operand.vmem [shape: bf16[128,128], index: 5, kind: input, shape index: {}]   ;;  %s695_s2 = inlined_call_operand.vmem [shape: f32[1,128], index: 2, kind: input, shape index: {}]   ;;  %s696_s4 = inlined_call_operand.vmem [shape: f32[1,128], index: 4, kind: input, shape index: {}]   ;;  %s697_s6 = inlined_call_operand.vmem [shape: f32[1,128], index: 6, kind: input, shape index: {}]   ;;  %s698_s7 = inlined_call_operand.vmem [shape: f32[16,128], index: 7, kind: output, shape index: {}]  }
   0x1   :  { %438 = vmatprep.subr.bf16.mxu0 %v529_v0  ;;  %v500_v1 = vld [vmem:[%s691_s1 + $0x38] sm:$0xff]   ;;  %454 = vmatprep.mubr.msk.bf16.mxu0 %vm530_vm0, %v529_v0  ;;  %v501_v2 = vld [vmem:[%s691_s1 + $0x30] sm:$0xff]   ;;  %v502_v3 = vld [vmem:[%s691_s1 + $0x28] sm:$0xff]  }
   0x2   :  { %458 = vmatprep.subr.bf16.mxu1 %v529_v0  ;;  %474 = vmatprep.mubr.msk.bf16.mxu1 %vm530_vm0, %v529_v0  ;;  %v509_v4 = vld [vmem:[%s692_s3 + $0x38] sm:$0xff]   ;;  %v503_v5 = vld [vmem:[%s691_s1 + $0x20] sm:$0xff]   ;;  %v510_v6 = vld [vmem:[%s692_s3 + $0x30] sm:$0xff]  }
   0x3   :  { %439 = vmatpush3.bf16.msra.mxu0 %v500_v1  ;;  %459 = vmatpush3.bf16.msra.mxu1 %v509_v4  ;;  %v504_v7 = vld [vmem:[%s691_s1 + $0x18] sm:$0xff]   ;;  %v505_v8 = vld [vmem:[%s691_s1 + $0x10] sm:$0xff]   ;;  %v506_v9 = vld [vmem:[%s691_s1 + $0x8] sm:$0xff]  }
   0x4   :  { %440 = vmatprep.subr.bf16.mxu0 %v529_v0  ;;  %460 = vmatprep.subr.bf16.mxu1 %v529_v0  ;;  %v507_v10 = vld [vmem:[%s691_s1] sm:$0xff]   ;;  %v511_v12 = vld [vmem:[%s692_s3 + $0x28] sm:$0xff]   ;;  %v513_v14 = vld [vmem:[%s692_s3 + $0x18] sm:$0xff]  }
   0x5   :  { %v508_v11 = vld [vmem:[%s693_s0] sm:$0xff]   ;;  %v514_v15 = vld [vmem:[%s692_s3 + $0x10] sm:$0xff]   ;;  %v515_v16 = vld [vmem:[%s692_s3 + $0x8] sm:$0xff]  }
   0x6   :  { %v512_v13 = vld [vmem:[%s692_s3 + $0x20] sm:$0xff]   ;;  %v517_v18 = vld [vmem:[%s694_s5 + $0x38] sm:$0xff]   ;;  %v518_v19 = vld [vmem:[%s694_s5 + $0x30] sm:$0xff]  }
   0x7   :  { %441 = vmatpush3.bf16.msra.mxu0 %v501_v2  ;;  %461 = vmatpush3.bf16.msra.mxu1 %v510_v6  ;;  %v516_v17 = vld [vmem:[%s692_s3] sm:$0xff]   ;;  %v519_v20 = vld [vmem:[%s694_s5 + $0x28] sm:$0xff]   ;;  %v521_v22 = vld [vmem:[%s694_s5 + $0x18] sm:$0xff]  }
   0x8   :  { %442 = vmatprep.subr.bf16.mxu0 %v529_v0  ;;  %462 = vmatprep.subr.bf16.mxu1 %v529_v0  ;;  %v520_v21 = vld [vmem:[%s694_s5 + $0x20] sm:$0xff]   ;;  %v522_v33 = vld [vmem:[%s694_s5 + $0x10] sm:$0xff]   ;;  %v523_v34 = vld [vmem:[%s694_s5 + $0x8] sm:$0xff]  }
   0x9   :  { %v383_v23 = vld [vmem:[%s695_s2] ss:$0 sm:$0xff] }
   0xa   :  { %v524_v35 = vld [vmem:[%s694_s5] sm:$0xff]  }
   0xb   :  { %443 = vmatpush3.bf16.msra.mxu0 %v502_v3  ;;  %463 = vmatpush3.bf16.msra.mxu1 %v511_v12  ;;  %v393_v36 = vld [vmem:[%s696_s4] ss:$0 sm:$0xff] }
   0xc   :  { %444 = vmatprep.subr.bf16.mxu0 %v529_v0  ;;  %464 = vmatprep.subr.bf16.mxu1 %v529_v0  ;;  %v402_v46 = vld [vmem:[%s697_s6] ss:$0 sm:$0xff] }
   0xf   :  { %445 = vmatpush3.bf16.msra.mxu0 %v503_v5  ;;  %465 = vmatpush3.bf16.msra.mxu1 %v512_v13 }
  0x10   :  { %446 = vmatprep.subr.bf16.mxu0 %v529_v0  ;;  %466 = vmatprep.subr.bf16.mxu1 %v529_v0 }
  0x13   :  { %447 = vmatpush3.bf16.msra.mxu0 %v504_v7  ;;  %467 = vmatpush3.bf16.msra.mxu1 %v513_v14 }
  0x14   :  { %448 = vmatprep.subr.bf16.mxu0 %v529_v0  ;;  %468 = vmatprep.subr.bf16.mxu1 %v529_v0 }
  0x17   :  { %449 = vmatpush3.bf16.msra.mxu0 %v505_v8  ;;  %469 = vmatpush3.bf16.msra.mxu1 %v514_v15 }
  0x18   :  { %450 = vmatprep.subr.bf16.mxu0 %v529_v0  ;;  %470 = vmatprep.subr.bf16.mxu1 %v529_v0 }
  0x1b   :  { %451 = vmatpush3.bf16.msra.mxu0 %v506_v9  ;;  %471 = vmatpush3.bf16.msra.mxu1 %v515_v16 }
  0x1c   :  { %452 = vmatprep.subr.bf16.mxu0 %v529_v0  ;;  %472 = vmatprep.subr.bf16.mxu1 %v529_v0 }
  0x1f   :  { %453 = vmatpush3.bf16.msra.mxu0 %v507_v10  ;;  %473 = vmatpush3.bf16.msra.mxu1 %v516_v17 }
  0x20   :  { %478 = vmatprep.subr.bf16.mxu0 %v529_v0 }
  0x22   :  { %455 = vmatmul.mubr.bf16.vlgmr.msra.gmra.mxu0 %v508_v11 }
  0x23   :  { %494 = vmatprep.mubr.msk.bf16.mxu0 %vm530_vm0, %v529_v0  ;;  %479 = vmatpush3.bf16.msra.mxu0 %v517_v18 }
  0x24   :  { %480 = vmatprep.subr.bf16.mxu0 %v529_v0 }
  0x27   :  { %481 = vmatpush3.bf16.msra.mxu0 %v518_v19 }
  0x28   :  { %482 = vmatprep.subr.bf16.mxu0 %v529_v0 }
  0x2b   :  { %483 = vmatpush3.bf16.msra.mxu0 %v519_v20 }
  0x2c   :  { %484 = vmatprep.subr.bf16.mxu0 %v529_v0 }
  0x2f   :  { %485 = vmatpush3.bf16.msra.mxu0 %v520_v21 }
  0x30   :  { %486 = vmatprep.subr.bf16.mxu0 %v529_v0 }
  0x33   :  { %487 = vmatpush3.bf16.msra.mxu0 %v521_v22 }
  0x34   :  { %488 = vmatprep.subr.bf16.mxu0 %v529_v0 }
  0x37   :  { %489 = vmatpush3.bf16.msra.mxu0 %v522_v33 }
  0x38   :  { %490 = vmatprep.subr.bf16.mxu0 %v529_v0 }
  0x3b   :  { %491 = vmatpush3.bf16.msra.mxu0 %v523_v34 }
  0x3c   :  { %492 = vmatprep.subr.bf16.mxu0 %v529_v0 }
  0x3f   :  { %493 = vmatpush3.bf16.msra.mxu0 %v524_v35 }
  0xe2   :  { %v140_v24 = vpop.f32.mrf.mxu0 }
  0xe3   :  { %v141_v25 = vadd.f32 %v383_v23, %v140_v24 }
  0xe4   :  { %v456_v26 = vpop.f32.mrf.mxu0 }
  0xe5   :  { %525 = vtanh.f32 %v141_v25 }
  0xe6   :  { %v143_v27 = vpop.f32.mrf.mxu0 }
  0xe7   :  { %v144_v28 = vadd.f32 %v383_v23, %v143_v27 }
  0xe8   :  { %v457_v29 = vpop.f32.mrf.mxu0 }
  0xe9   :  { %527 = vtanh.f32 %v144_v28 }
  0xf2   :  { %v526_v30 = vpop.eup %525 }
  0xf6   :  { %v528_v31 = vpop.eup %527 }
  0xf7   :  { %v149_v32 = vpack.c.bf16 %v528_v31, %v526_v30 }
  0xf9   :  { %475 = vmatmul.mubr.bf16.vlgmr.msra.gmra.mxu1 %v149_v32 }
 0x1b9   :  { %v255_v37 = vpop.f32.mrf.mxu1 }
 0x1ba   :  { %v256_v39 = vadd.f32 %v393_v36, %v255_v37 }
 0x1bb   :  { %v476_v38 = vpop.f32.mrf.mxu1 }
 0x1bc   :  { %v262_v43 = vmax.f32 %v256_v39, 0.0 }
 0x1bd   :  { %v258_v40 = vpop.f32.mrf.mxu1 }
 0x1be   :  { %v259_v41 = vadd.f32 %v393_v36, %v258_v40 }
 0x1bf   :  { %v477_v42 = vpop.f32.mrf.mxu1 }
 0x1c0   :  { %v263_v44 = vmax.f32 %v259_v41, 0.0 }
 0x1c2   :  { %v264_v45 = vpack.c.bf16 %v263_v44, %v262_v43 }
 0x1c4   :  { %495 = vmatmul.mubr.bf16.vlgmr.msra.gmra.mxu0 %v264_v45 }
 0x284   :  { %v370_v47 = vpop.f32.mrf.mxu0 }
 0x285   :  { %v371_v48 = vadd.f32 %v402_v46, %v370_v47 }
 0x286   :  { %v496_v49 = vpop.f32.mrf.mxu0 }
 0x287   :  { %377 = vst [vmem:[%s698_s7] sm:$0xff] %v371_v48 }
 0x288   :  { %v373_v50 = vpop.f32.mrf.mxu0 }
 0x289   :  { %v374_v51 = vadd.f32 %v402_v46, %v373_v50 }
 0x28a   :  { %v497_v52 = vpop.f32.mrf.mxu0 }
 0x28b   :  { %378 = vst [vmem:[%s698_s7 + $0x8] sm:$0xff] %v374_v51 }

</bundles_post_ra>
